<compile_context>
chip_gen: v6e
topology: v6e:2x2x1
jax: 0.10.0
libtpu: 0.0.40
codegen_flags: <defaults>
</compile_context>

<pallas_src>
from functools import partial

import jax
import jax.numpy as jnp
from jax import lax
from jax.experimental import pallas as pl
from jax.experimental.pallas import tpu as pltpu

_VMEM_LIMIT = 32 * 1024 * 1024  # safe on v5e/v6e/v7x


def _choose_tile(dim, preferred, align):
    """Largest t <= preferred with dim % t == 0 and t % align == 0.

    Falls back to the full dimension (always a legal single block)."""
    if dim <= preferred:
        return dim
    t = (preferred // align) * align
    while t >= align:
        if dim % t == 0:
            return t
        t -= align
    return dim


# ------------------------- tiled Linear (x @ W + b) ------------------------- #

def _linear_kernel(x_ref, w_ref, b_ref, o_ref, acc_ref):
    @pl.when(pl.program_id(2) == 0)
    def _init():
        acc_ref[...] = jnp.zeros_like(acc_ref)

    acc_ref[...] += jnp.dot(x_ref[...], w_ref[...],
                            preferred_element_type=jnp.float32)

    @pl.when(pl.program_id(2) == pl.num_programs(2) - 1)
    def _flush():
        o_ref[...] = (acc_ref[...] + b_ref[...].astype(jnp.float32)).astype(o_ref.dtype)


def pallas_linear(x2d, w, b, *, tm=256, tn=256, tk=512):
    M, K = x2d.shape
    _, Nout = w.shape
    tm = _choose_tile(M, tm, 8)      # sublane axis of x / out
    tn = _choose_tile(Nout, tn, 128)  # lane axis of w / b / out
    tk = _choose_tile(K, tk, 128)    # lane axis of x, sublane axis of w
    grid = (M // tm, Nout // tn, K // tk)
    return pl.pallas_call(
        _linear_kernel,
        out_shape=jax.ShapeDtypeStruct((M, Nout), x2d.dtype),
        grid_spec=pltpu.PrefetchScalarGridSpec(
            num_scalar_prefetch=0,
            grid=grid,
            in_specs=[
                pl.BlockSpec((tm, tk), lambda i, j, k: (i, k)),
                pl.BlockSpec((tk, tn), lambda i, j, k: (k, j)),
                pl.BlockSpec((1, tn), lambda i, j, k: (0, j)),
            ],
            out_specs=pl.BlockSpec((tm, tn), lambda i, j, k: (i, j)),
            scratch_shapes=[pltpu.VMEM((tm, tn), jnp.float32)],
        ),
        compiler_params=pltpu.CompilerParams(
            dimension_semantics=("parallel", "parallel", "arbitrary"),
            vmem_limit_bytes=_VMEM_LIMIT),
    )(x2d, w, b.reshape(1, Nout))


# ------------------------------ attention core ------------------------------ #

def _choose_head_group(H, D, N):
    """How many heads to process per grid step (amortize per-step overhead)."""
    budget = 6 * 1024 * 1024  # rough f32 working-set cap per step
    # block constraint: sublane dim of the (G, D) tile must be %8==0 or == H
    cands = [g for g in range(H, 0, -1) if H % g == 0 and (g == H or g % 8 == 0)]
    for g in cands:
        if 4 * (g * N * N + 4 * N * g * D) <= budget:
            return g
    return cands[-1]


def _attn_kernel(q_ref, k_ref, v_ref, o_ref, *, inv_scale, heads_per_block):
    # q/k/v/o blocks: (N, G, D)  -- head group G of one batch element.
    q = q_ref[...]
    k = k_ref[...]
    v = v_ref[...]
    for gi in range(heads_per_block):          # static unrolled loop over heads
        qh = q[:, gi, :]                       # (N, D)
        kh = k[:, gi, :]
        vh = v[:, gi, :]
        # energy = q @ k^T, contracting the head dim (no explicit transpose)
        s = lax.dot_general(qh, kh, (((1,), (1,)), ((), ())),
                            preferred_element_type=jnp.float32)   # (N, N)
        m = jnp.max(s, axis=-1, keepdims=True)
        e = jnp.exp(s - m)
        p = e * pl.reciprocal(jnp.sum(e, axis=-1, keepdims=True), approx=True)
        oh = jnp.dot(p, vh.astype(jnp.float32),
                     preferred_element_type=jnp.float32)          # (N, D)
        # reference applies /sqrt(E) to att AFTER softmax; scaling the output
        # instead is mathematically identical and touches N*D (not N*N) elems.
        o_ref[:, gi, :] = (oh * inv_scale).astype(o_ref.dtype)


def pallas_attention(qkv5, scaling):
    # qkv5: (B, N, 3, H, D) contiguous '(qkv h d)' layout from the permuted qkv Linear.
    B, N, _, H, D = qkv5.shape
    G = _choose_head_group(H, D, N)
    inv_scale = 1.0 / float(scaling)

    def qkv_spec(r):
        return pl.BlockSpec((pl.Squeezed(), N, pl.Squeezed(), G, D),
                            lambda b, g, r=r: (b, 0, r, g, 0))

    return pl.pallas_call(
        partial(_attn_kernel, inv_scale=inv_scale, heads_per_block=G),
        out_shape=jax.ShapeDtypeStruct((B, N, H, D), qkv5.dtype),
        grid=(B, H // G),
        in_specs=[qkv_spec(0), qkv_spec(1), qkv_spec(2)],
        out_specs=pl.BlockSpec((pl.Squeezed(), N, G, D),
                               lambda b, g: (b, 0, g, 0)),
        compiler_params=pltpu.CompilerParams(
            dimension_semantics=("parallel", "parallel"),
            vmem_limit_bytes=_VMEM_LIMIT),
    )(qkv5, qkv5, qkv5)


# ------------------------------ module wrapper ------------------------------ #

def prepare_mha_params(params, num_heads):
    """One-time offline column permutation of the qkv Linear.

    The PyTorch einops pattern 'b n (h d qkv) -> qkv b h n d' makes qkv the
    fastest-varying factor; permuting the weight columns to '(qkv h d)' order
    makes q/k/v contiguous slabs so no XLA-side gather is needed at run time.
    """
    E = params["w_proj"].shape[0]
    D = E // num_heads
    c = jnp.arange(3 * E)
    r = c // E          # qkv index of the NEW column
    rem = c % E
    h = rem // D
    d = rem % D
    perm = h * (D * 3) + d * 3 + r   # OLD column feeding new column c
    return {
        "w_qkv": params["w_qkv"][:, perm],
        "b_qkv": params["b_qkv"][perm],
        "w_proj": params["w_proj"],
        "b_proj": params["b_proj"],
    }


def multi_head_attention(x, prepared_params, num_heads):
    B, N, E = x.shape
    H = num_heads
    D = E // H
    x2d = x.reshape(B * N, E)

    # qkv Linear (permuted weights -> '(qkv h d)' contiguous output)
    qkv = pallas_linear(x2d, prepared_params["w_qkv"], prepared_params["b_qkv"])
    qkv5 = qkv.reshape(B, N, 3, H, D)            # free view

    # attention core; writes (B, N, H, D) directly
    out = pallas_attention(qkv5, scaling=float(E) ** 0.5)

    # 'b h n d -> b n (h d)' is now a free view
    out2d = out.reshape(B * N, E)

    # projection Linear
    y = pallas_linear(out2d, prepared_params["w_proj"], prepared_params["b_proj"])
    return y.reshape(B, N, E)


# ---------------------------- pure-JAX reference ---------------------------- #

def reference_mha(x, params, num_heads):
    B, N, E = x.shape
    H = num_heads
    D = E // H
    qkv = x @ params["w_qkv"] + params["b_qkv"]
    qkv = qkv.reshape(B, N, H, D, 3)
    qkv = jnp.transpose(qkv, (4, 0, 2, 1, 3))
    q, k, v = qkv[0], qkv[1], qkv[2]
    energy = jnp.einsum("bhqd,bhkd->bhqk", q, k)
    att = jax.nn.softmax(energy, axis=-1) / (float(E) ** 0.5)
    out = jnp.einsum("bhal,bhlv->bhav", att, v)
    out = jnp.transpose(out, (0, 2, 1, 3)).reshape(B, N, E)
    return out @ params["w_proj"] + params["b_proj"]


# ---------------------------------- main ------------------------------------ #

if __name__ == "__main__":
    # Small, forward-consistent shapes: emb_size=64, num_heads=8 -> head dim 8.
    B, N, E, H = 2, 8, 64, 8

    key = jax.random.PRNGKey(0)
    k1, k2, k3, k4, k5 = jax.random.split(key, 5)

    # Deterministic synthetic parameters (PyTorch Linear-style uniform bound).
    bound = 1.0 / (E ** 0.5)
    params = {
        # stored as (in, out) so the kernel computes x @ W + b
        "w_qkv": jax.random.uniform(k1, (E, 3 * E), jnp.float32, -bound, bound),
        "b_qkv": jax.random.uniform(k2, (3 * E,), jnp.float32, -bound, bound),
        "w_proj": jax.random.uniform(k3, (E, E), jnp.float32, -bound, bound),
        "b_proj": jax.random.uniform(k4, (E,), jnp.float32, -bound, bound),
    }
    x = jax.random.normal(k5, (B, N, E), jnp.float32)

    # one-time weight-layout preparation (offline in a real deployment)
    prepared = jax.tree_util.tree_map(jax.block_until_ready,
                                      prepare_mha_params(params, H))

    out = multi_head_attention(x, prepared, H)
    out = jax.block_until_ready(out)

    ref = reference_mha(x, params, H)
    assert out.shape == (B, N, E)
    assert jnp.allclose(out, ref, atol=2e-3, rtol=2e-3), "mismatch vs reference"

    print("KERNEL_OK")
</pallas_src>

<mosaic_0001>
module attributes {stable_mosaic.version = 11 : i64} {
  func.func @_linear_kernel(%arg0: i32, %arg1: i32, %arg2: i32, %arg3: memref<16x64xf32, #tpu.memory_space<vmem>>, %arg4: memref<64x192xf32, #tpu.memory_space<vmem>>, %arg5: memref<1x192xf32, #tpu.memory_space<vmem>>, %arg6: memref<16x192xf32, #tpu.memory_space<vmem>>, %arg7: memref<16x192xf32, #tpu.memory_space<vmem>>) attributes {dimension_semantics = [#tpu.dimension_semantics<parallel>, #tpu.dimension_semantics<parallel>, #tpu.dimension_semantics<arbitrary>], iteration_bounds = array<i64: 1, 1, 1>, scalar_prefetch = 0 : i64, scratch_operands = 1 : i64, tpu.core_type = #tpu.core_type<tc>, window_params = [{transform_indices = @transform_0, window_bounds = array<i64: 16, 64>}, {transform_indices = @transform_1, window_bounds = array<i64: 64, 192>}, {transform_indices = @transform_2, window_bounds = array<i64: 1, 192>}, {transform_indices = @transform_3, window_bounds = array<i64: 16, 192>}]} {
    %c0_i32 = arith.constant 0 : i32
    %0 = arith.cmpi eq, %arg2, %c0_i32 : i32
    %1 = arith.extui %0 : i1 to i32
    %c0_i32_0 = arith.constant 0 : i32
    %2 = arith.cmpi ne, %1, %c0_i32_0 : i32
    scf.if %2 {
      %cst_10 = arith.constant 0.000000e+00 : f32
      %12 = vector.broadcast %cst_10 : f32 to vector<16x192xf32>
      %c0_11 = arith.constant 0 : index
      %c0_12 = arith.constant 0 : index
      %13 = vector.load %arg7[%c0_11, %c0_12] : memref<16x192xf32, #tpu.memory_space<vmem>>, vector<16x192xf32>
      tpu.vector_store %arg7[%c0_11, %c0_12], %12 {strides = array<i32>} : memref<16x192xf32, #tpu.memory_space<vmem>>, vector<16x192xf32>,
    } else {
    }
    %c0 = arith.constant 0 : index
    %c0_1 = arith.constant 0 : index
    %3 = vector.load %arg7[%c0, %c0_1] : memref<16x192xf32, #tpu.memory_space<vmem>>, vector<16x192xf32>
    %c0_2 = arith.constant 0 : index
    %c0_3 = arith.constant 0 : index
    %4 = vector.load %arg3[%c0_2, %c0_3] : memref<16x64xf32, #tpu.memory_space<vmem>>, vector<16x64xf32>
    %c0_4 = arith.constant 0 : index
    %c0_5 = arith.constant 0 : index
    %5 = vector.load %arg4[%c0_4, %c0_5] : memref<64x192xf32, #tpu.memory_space<vmem>>, vector<64x192xf32>
    %cst = arith.constant dense<0.000000e+00> : vector<16x192xf32>
    %6 = tpu.matmul %4, %5, %cst {dimension_numbers = #tpu.dot_dimension_numbers<[1], [0], [0], [1], [0, 0, 1, 1], [], []>} : vector<16x64xf32>, vector<64x192xf32>, vector<16x192xf32> -> vector<16x192xf32>
    %7 = arith.addf %3, %6 : vector<16x192xf32>
    %c0_6 = arith.constant 0 : index
    %c0_7 = arith.constant 0 : index
    %8 = vector.load %arg7[%c0_6, %c0_7] : memref<16x192xf32, #tpu.memory_space<vmem>>, vector<16x192xf32>
    tpu.vector_store %arg7[%c0_6, %c0_7], %7 {strides = array<i32>} : memref<16x192xf32, #tpu.memory_space<vmem>>, vector<16x192xf32>,
    %c0_i32_8 = arith.constant 0 : i32
    %9 = arith.cmpi eq, %arg2, %c0_i32_8 : i32
    %10 = arith.extui %9 : i1 to i32
    %c0_i32_9 = arith.constant 0 : i32
    %11 = arith.cmpi ne, %10, %c0_i32_9 : i32
    scf.if %11 {
      %c0_10 = arith.constant 0 : index
      %c0_11 = arith.constant 0 : index
      %12 = vector.load %arg7[%c0_10, %c0_11] : memref<16x192xf32, #tpu.memory_space<vmem>>, vector<16x192xf32>
      %c0_12 = arith.constant 0 : index
      %c0_13 = arith.constant 0 : index
      %13 = vector.load %arg5[%c0_12, %c0_13] : memref<1x192xf32, #tpu.memory_space<vmem>>, vector<1x192xf32>
      %14 = vector.broadcast %13 : vector<1x192xf32> to vector<16x192xf32>
      %15 = arith.addf %12, %14 : vector<16x192xf32>
      %c0_14 = arith.constant 0 : index
      %c0_15 = arith.constant 0 : index
      %16 = vector.load %arg6[%c0_14, %c0_15] : memref<16x192xf32, #tpu.memory_space<vmem>>, vector<16x192xf32>
      tpu.vector_store %arg6[%c0_14, %c0_15], %15 {strides = array<i32>} : memref<16x192xf32, #tpu.memory_space<vmem>>, vector<16x192xf32>,
    } else {
    }
    return
  }
  func.func @transform_0(%arg0: i32, %arg1: i32, %arg2: i32) -> (i32, i32) {
    %c0_i32 = arith.constant 0 : i32
    return %arg0, %arg2 : i32, i32
  }
  func.func @transform_1(%arg0: i32, %arg1: i32, %arg2: i32) -> (i32, i32) {
    %c0_i32 = arith.constant 0 : i32
    return %arg2, %arg1 : i32, i32
  }
  func.func @transform_2(%arg0: i32, %arg1: i32, %arg2: i32) -> (i32, i32) {
    %c0_i32 = arith.constant 0 : i32
    %c0_i32_0 = arith.constant 0 : i32
    return %c0_i32, %arg1 : i32, i32
  }
  func.func @transform_3(%arg0: i32, %arg1: i32, %arg2: i32) -> (i32, i32) {
    %c0_i32 = arith.constant 0 : i32
    return %arg0, %arg1 : i32, i32
  }
}

</mosaic_0001>

<bundles_post_ra>
// kernel: tpu_custom_call.1
= control target key start
LH: loop header
LB: loop body
LE: loop exit
PB: predicated region body
PF: predicated region fallthrough
CT: control target
= control target key end

     0   :  { %8 = vsyncpa [#allocation4], 0  ;;  %s357_s0 = inlined_call_operand.hbm [shape: f32[16,64], index: 0, kind: input, shape index: {}]   ;;  %s358_s1 = inlined_call_operand.hbm [shape: f32[64,192], index: 1, kind: input, shape index: {}]   ;;  %s359_s2 = inlined_call_operand.vmem [shape: f32[1,192], index: 2, kind: input, shape index: {}]   ;;  %s360_s3 = inlined_call_operand.hbm [shape: f32[16,192], index: 3, kind: output, shape index: {}]  }
   0x1   :  { %9 = vsyncpa [#allocation7], 0 }
   0x2   :  { %10 = vsyncpa [#allocation5], 0  ;;  %s303_s12 = smov [#allocation3]  }
   0x3   :  { %s16_s13 = sshll.u32 %s303_s12, 4  ;;  %s17_s13 = int_to_ptr.vmem [resolvable:$true] %s16_s13 }
   0x4   :  { %s245_s14 = scalar_lea.vmem %s17_s13, 256  ;;  %p250_p1 = scmp.lt.s32.totalorder %s17_s13, %s17_s13 }
   0x5   :  { %p246_p0 = scmp.ne.s32.totalorder %s17_s13, %s245_s14  ;;  %p251_p2 = scmp.lt.s32.totalorder %s245_s14, %s245_s14 }
   0x7   :  { %p252_p3 = por %p251_p2, %p250_p1 }
   0x9   :  { %p253_p4 = pnand %p252_p3, %p246_p0 }
   0xb   :  { %256 = shalt.err (!%p253_p4)
}
   0xc   :  { %s304_s15 = smov 128   ;;  %s305_s16 = smov 8  }
   0xd   :  { %22 = dma.hbm_to_vmem [thread:$0]  %s357_s0, 256, %s17_s13, [#allocation4], %s304_s15, %s304_s15, %s305_s16  }
   0xe   :  { %s306_s19 = smov [#allocation6]  }
   0xf   :  { %s28_s20 = sshll.u32 %s306_s19, 4  ;;  %s29_s20 = int_to_ptr.vmem [resolvable:$true] %s28_s20 }
  0x10   :  { %s265_s21 = scalar_lea.vmem %s29_s20, 2048  ;;  %p270_p6 = scmp.lt.s32.totalorder %s29_s20, %s29_s20 }
  0x11   :  { %p266_p5 = scmp.ne.s32.totalorder %s29_s20, %s265_s21  ;;  %p271_p7 = scmp.lt.s32.totalorder %s265_s21, %s265_s21 }
  0x13   :  { %p272_p8 = por %p271_p7, %p270_p6 }
  0x15   :  { %p273_p9 = pnand %p272_p8, %p266_p5 }
  0x17   :  { %276 = shalt.err (!%p273_p9)
}
  0x18   :  { %s307_s22 = smov 256   ;;  %s308_s23 = smov 16  }
  0x19   :  { %34 = dma.hbm_to_vmem [thread:$0]  %s358_s1, 2048, %s29_s20, [#allocation7], %s307_s22, %s307_s22, %s308_s23  }
  0x1a   :  { %297 = dma.done.wait [#allocation4], 256  }
  0x1b   :  { %298 = vsyncadd [#allocation4], 4294967040 }
  0x1c   :  { %299 = dma.done.wait [#allocation7], 2048  }
  0x1d   :  { %300 = vsyncadd [#allocation7], 4294965248  ;;  %vm48_vm0 = vcmask 523264   ;;  %v309_v0 = vmov 0.0   ;;  %v73_v1 = vld [vmem:[#allocation6 + $0x78] sm:$0xff]  ;;  %v72_v2 = vld [vmem:[#allocation6 + $0x70] sm:$0xff]  ;;  %v175_v19 = vlaneseq }
  0x1e   :  { %145 = vmatprep.mubr.f32.mxu0 %v309_v0  ;;  %151 = vmatprep.mubr.f32.mxu1 %v309_v0  ;;  %49 = vst.msk [vmem:[#allocation2 + $0x8] sm:$0xff] %vm48_vm0, %v309_v0  ;;  %51 = vst.msk [vmem:[#allocation2 + $0x18] sm:$0xff] %vm48_vm0, %v309_v0  ;;  %v71_v3 = vld [vmem:[#allocation6 + $0x68] sm:$0xff]  ;;  %v70_v4 = vld [vmem:[#allocation6 + $0x60] sm:$0xff] }
  0x1f   :  { %97 = vmatprep.subr.mxu0 %v73_v1  ;;  %213 = vmatprep.subr.mxu1 %v73_v1  ;;  %v69_v5 = vld [vmem:[#allocation6 + $0x58] sm:$0xff]  ;;  %v68_v6 = vld [vmem:[#allocation6 + $0x50] sm:$0xff]  ;;  %v67_v7 = vld [vmem:[#allocation6 + $0x48] sm:$0xff]  ;;  %v176_v20 = vshrl.u32 %v175_v19, 7 }
  0x20   :  { %98 = vmatpush1.msra.mxu0 %v72_v2  ;;  %221 = vmatpush1.msra.mxu1 %v72_v2  ;;  %v66_v8 = vld [vmem:[#allocation6 + $0x40] sm:$0xff]  ;;  %v65_v9 = vld [vmem:[#allocation6 + $0x38] sm:$0xff]  ;;  %v64_v10 = vld [vmem:[#allocation6 + $0x30] sm:$0xff] }
  0x21   :  { %99 = vmatprep.subr.mxu0 %v71_v3  ;;  %214 = vmatprep.subr.mxu1 %v71_v3  ;;  %v63_v11 = vld [vmem:[#allocation6 + $0x28] sm:$0xff]  ;;  %v62_v12 = vld [vmem:[#allocation6 + $0x20] sm:$0xff]  ;;  %v61_v13 = vld [vmem:[#allocation6 + $0x18] sm:$0xff]  ;;  %v177_v21 = vsub.s32 0, %v176_v20  ;;  %v181_v34 = vsub.s32 1, %v176_v20 }
  0x22   :  { %100 = vmatpush1.msra.mxu0 %v70_v4  ;;  %222 = vmatpush1.msra.mxu1 %v70_v4  ;;  %v60_v14 = vld [vmem:[#allocation6 + $0x10] sm:$0xff]  ;;  %v59_v15 = vld [vmem:[#allocation6 + $0x8] sm:$0xff]  ;;  %v58_v16 = vld [vmem:[#allocation6] sm:$0xff] }
  0x23   :  { %101 = vmatprep.subr.mxu0 %v69_v5  ;;  %215 = vmatprep.subr.mxu1 %v69_v5  ;;  %v56_v17 = vld [vmem:[#allocation3] sm:$0xff]  ;;  %v57_v18 = vld [vmem:[#allocation3 + $0x8] sm:$0xff] }
  0x24   :  { %102 = vmatpush1.msra.mxu0 %v68_v6  ;;  %223 = vmatpush1.msra.mxu1 %v68_v6  ;;  %v173_v22 = vld [vmem:[%s359_s2] sm:$0x3]  ;;  %s310_s2 = smov [#allocation8]  }
  0x25   :  { %103 = vmatprep.subr.mxu0 %v67_v7  ;;  %216 = vmatprep.subr.mxu1 %v67_v7  ;;  %v178_v23 = vrot.slane %v173_v22, %v177_v21  ;;  %v53_v26 = vld [vmem:[#allocation2 + $0x8] sm:$0xff]  ;;  %v55_v27 = vld [vmem:[#allocation2 + $0x18] sm:$0xff]  ;;  %v182_v35 = vrot.slane %v173_v22, %v181_v34  ;;  %s198_s26 = sshll.u32 %s310_s2, 4  ;;  %s199_s26 = int_to_ptr.vmem [resolvable:$true] %s198_s26 }
  0x26   :  { %104 = vmatpush1.msra.mxu0 %v66_v8  ;;  %224 = vmatpush1.msra.mxu1 %v66_v8  ;;  %s277_s27 = scalar_lea.vmem %s199_s26, 512  ;;  %p282_p11 = scmp.lt.s32.totalorder %s199_s26, %s199_s26 }
  0x27   :  { %105 = vmatprep.subr.mxu0 %v65_v9  ;;  %217 = vmatprep.subr.mxu1 %v65_v9  ;;  %p278_p10 = scmp.ne.s32.totalorder %s199_s26, %s277_s27  ;;  %p283_p12 = scmp.lt.s32.totalorder %s277_s27, %s277_s27 }
  0x28   :  { %106 = vmatpush1.msra.mxu0 %v64_v10  ;;  %225 = vmatpush1.msra.mxu1 %v64_v10 }
  0x29   :  { %107 = vmatprep.subr.mxu0 %v63_v11  ;;  %218 = vmatprep.subr.mxu1 %v63_v11  ;;  %p284_p13 = por %p283_p12, %p282_p11 }
  0x2a   :  { %108 = vmatpush1.msra.mxu0 %v62_v12  ;;  %226 = vmatpush1.msra.mxu1 %v62_v12 }
  0x2b   :  { %109 = vmatprep.subr.mxu0 %v61_v13  ;;  %219 = vmatprep.subr.mxu1 %v61_v13  ;;  %p285_p0 = pnand %p284_p13, %p278_p10 }
  0x2c   :  { %110 = vmatpush1.msra.mxu0 %v60_v14  ;;  %227 = vmatpush1.msra.mxu1 %v60_v14 }
  0x2d   :  { %111 = vmatprep.subr.mxu0 %v59_v15  ;;  %220 = vmatprep.subr.mxu1 %v59_v15 }
  0x2e   :  { %112 = vmatpush1.msra.mxu0 %v58_v16  ;;  %228 = vmatpush1.msra.mxu1 %v58_v16 }
  0x2f   :  { %211 = vmatmul.mubr.msk.f32.vlgmr.msra.gmra.mxu0 %vm48_vm0, %v56_v17  ;;  %212 = vmatmul.mubr.msk.f32.vlgmr.msra.gmra.mxu1 %vm48_vm0, %v57_v18 }
  0xef   :  { %v147_v24 = vpop.f32.mrf.mxu0  ;;  %v153_v25 = vpop.f32.mrf.mxu1 }
  0xf0   :  { %v185_v32 = vadd.f32 %v178_v23, %v147_v24  ;;  %v187_v33 = vadd.f32 %v178_v23, %v153_v25 }
  0xf1   :  { %v149_v28 = vpop.f32.mrf.mxu0  ;;  %v155_v29 = vpop.f32.mrf.mxu1 }
  0xf2   :  { %v159_v30 = vadd.f32 %v149_v28, %v53_v26  ;;  %v161_v31 = vadd.f32 %v155_v29, %v55_v27  ;;  %189 = vst [vmem:[#allocation8] sm:$0xff] %v185_v32  ;;  %191 = vst [vmem:[#allocation8 + $0x10] sm:$0xff] %v187_v33 }
  0xf4   :  { %163 = vst.msk [vmem:[#allocation2 + $0x8] sm:$0xff] %vm48_vm0, %v159_v30  ;;  %165 = vst.msk [vmem:[#allocation2 + $0x18] sm:$0xff] %vm48_vm0, %v161_v31 }
  0xfb   :  { %v170_v36 = vld [vmem:[#allocation2 + $0x8] sm:$0xff]  ;;  %v172_v37 = vld [vmem:[#allocation2 + $0x18] sm:$0xff] }
  0xfc   :  { %v186_v38 = vadd.f32 %v182_v35, %v170_v36  ;;  %v188_v39 = vadd.f32 %v182_v35, %v172_v37 }
  0xfe   :  { %190 = vst.msk [vmem:[#allocation8 + $0x8] sm:$0xff] %vm48_vm0, %v186_v38  ;;  %192 = vst.msk [vmem:[#allocation8 + $0x18] sm:$0xff] %vm48_vm0, %v188_v39 }
  0xff   :  { %288 = shalt.err (!%p285_p0)
}
 0x100   :  { %204 = dma.vmem_to_hbm [thread:$0]  %s199_s26, 512, %s360_s3, [#allocation5], %s307_s22, %s307_s22, %s308_s23  }
 0x101   :  { %301 = dma.done.wait [#allocation5], 512  }
 0x102   :  { %302 = vsyncadd [#allocation5], 4294966784 }
 0x103   :  { %208 = vsyncpa [#allocation4], 1 }
 0x104   :  { %209 = vsyncpa [#allocation7], 1 }
 0x105   :  { %210 = vsyncpa [#allocation5], 1 }

</bundles_post_ra>
